<compile_context>
chip_gen: v5e
topology: v5e:2x2
jax: 0.10.0
libtpu: 0.0.40
codegen_flags: <defaults>
</compile_context>

<pallas_src>
import functools

import jax
import jax.numpy as jnp
import numpy as np
from jax import lax
from jax.experimental import pallas as pl
from jax.experimental.pallas import tpu as pltpu

COMPUTE_DTYPE = jnp.bfloat16   # MXU operand dtype; accumulation/epilogue stay f32.
LANE = 128                     # lane width: all packed N/K blocks padded to this


def _round_up(x, m):
    return (x + m - 1) // m * m


# ----------------------------------------------------------------------------
# Fused kernel: (up-conv folded into conv1) -> conv3x3+ReLU -> conv3x3+ReLU
# ----------------------------------------------------------------------------
def _expand_kernel(x1d_ref, x2p_ref, w1_ref, w2_ref, b1_ref, b2_ref, out_ref,
                   *, ho1, ho2, npg):
    f32 = jnp.float32

    # Weights / biases loaded once per grid step (hoisted out of the image loop).
    w1 = w1_ref[...]          # (3*LX2 + 3*LX1, N1p) bf16
    w2 = w2_ref[...]          # (3*N1p,          N2p) bf16
    b1 = b1_ref[...]          # (1, N1p) f32  (includes the folded up-conv bias)
    b2 = b2_ref[...]          # (1, N2p) f32

    for p in range(npg):      # static unroll over the images in this group
        x2p = x2p_ref[p]      # (hu, LX2) bf16  — padded skip connection, lane-padded
        x1d = x1d_ref[p]      # (hu, LX1) bf16  — parity-split x1 rows (up-conv input)

        # conv1: ONE matmul.  K = 3 vertical taps x {skip block, up-path block};
        # horizontal taps live inside the banded weights, the ConvTranspose2d
        # weight is pre-multiplied into the up-path blocks at init.
        xcat1 = jnp.concatenate(
            [x2p[di:di + ho1, :] for di in range(3)]
            + [x1d[di:di + ho1, :] for di in range(3)], axis=-1)        # (ho1, K1)
        h1 = jnp.maximum(
            jnp.dot(xcat1, w1, preferred_element_type=f32) + b1, 0.0)   # (ho1, N1p) f32

        # conv2: ONE matmul.  Single bf16 cast of h1 before the tap slices.
        h1 = h1.astype(COMPUTE_DTYPE)
        xcat2 = jnp.concatenate(
            [h1[di:di + ho2, :] for di in range(3)], axis=-1)           # (ho2, K2)
        out_ref[p] = jnp.maximum(
            jnp.dot(xcat2, w2, preferred_element_type=f32) + b2, 0.0)   # (ho2, N2p) f32


# ----------------------------------------------------------------------------
# Init-time weight packing (numpy, once; NOT in the per-call hot path)
# ----------------------------------------------------------------------------
def _pack_up_weight(up_w, w1):
    """ConvTranspose2d weight (Cin, Cout, 2, 2) -> (2*W1*Cin, 2*W1*Cout) so that
    a parity-split x1 row times this matrix gives the up-sampled row in
    (row, W*Cout) packing (pixel shuffle absorbed into the matmul)."""
    w = np.asarray(up_w, np.float32)
    cin, cout = w.shape[0], w.shape[1]
    mat = np.zeros((2 * w1 * cin, 2 * w1 * cout), np.float32)
    for a in range(2):
        for b in range(2):
            for j in range(w1):
                r0 = a * w1 * cin + j * cin
                c0 = (2 * j + b) * cout
                mat[r0:r0 + cin, c0:c0 + cout] = w[:, :, a, b]
    return mat


def _pack_conv_weight(w_oihw, ci_lo, ci_hi, w_in):
    """Per-vertical-tap banded weights (kh, W_in*Cg, Wo*Cout):
       out[oi, oj*Cout+co] += sum_k X[oi+di, k] * W[di, k, oj*Cout+co]
       with W[di, (oj+dj)*Cg + ci, oj*Cout + co] = w[co, ci_lo+ci, di, dj]."""
    w = np.asarray(w_oihw, np.float32)
    cout, _, kh, kw = w.shape
    cg = ci_hi - ci_lo
    wo = w_in - kw + 1
    mat = np.zeros((kh, w_in * cg, wo * cout), np.float32)
    for di in range(kh):
        for dj in range(kw):
            blk = w[:, ci_lo:ci_hi, di, dj].T            # (Cg, Cout)
            for oj in range(wo):
                r0 = (oj + dj) * cg
                c0 = oj * cout
                mat[di, r0:r0 + cg, c0:c0 + cout] = blk
    return mat


def _pad_kn(m, kp, np_):
    out = np.zeros((kp, np_), np.float32)
    out[:m.shape[0], :m.shape[1]] = m
    return out


def prepare_params(params, h1, w1):
    """One-time packing of the PyTorch-layout weights into two lane-padded,
    K-concatenated matmul weights (+ biases).  The ConvTranspose2d weight/bias
    are folded into conv1's packed weight/bias here (both linear)."""
    del h1  # only widths enter the packed weights

    up_w = np.asarray(params["up_w"], np.float32)     # (Cin, Cout, 2, 2)
    c1_w = np.asarray(params["c1_w"], np.float32)     # (Cout, C2+Cout, 3, 3)
    c2_w = np.asarray(params["c2_w"], np.float32)     # (Cout, Cout, 3, 3)
    up_b = np.asarray(params["up_b"], np.float32)
    c1_b = np.asarray(params["c1_b"], np.float32)
    c2_b = np.asarray(params["c2_b"], np.float32)

    cin, cout = up_w.shape[0], up_w.shape[1]
    c2 = c1_w.shape[1] - cout                         # skip-connection channels
    wu = 2 * w1
    wo1, wo2 = wu - 2, wu - 4

    lx2 = _round_up(wu * c2, LANE)                    # x2p lane width (padded)
    lx1 = _round_up(2 * w1 * cin, LANE)               # x1d lane width (padded)
    n1p = _round_up(wo1 * cout, LANE)                 # conv1 output lanes (padded)
    n2p = _round_up(wo2 * cout, LANE)                 # conv2 output lanes (padded)

    wu_mat = _pack_up_weight(up_w, w1)                          # (2*w1*cin, wu*cout)
    w1a = _pack_conv_weight(c1_w, 0, c2, wu)                    # (3, wu*c2,   wo1*cout)
    w1b = _pack_conv_weight(c1_w, c2, c2 + cout, wu)            # (3, wu*cout, wo1*cout)
    w2p = _pack_conv_weight(c2_w, 0, cout, wo1)                 # (3, wo1*cout, wo2*cout)

    # Fold the transposed conv into conv1 (no nonlinearity in between):
    #   up = x1d @ WU + bup  =>  sum_di up[oi+di] @ W1b[di]
    #     = sum_di x1d[oi+di] @ (WU @ W1b[di]) + bup @ sum_di W1b[di]
    w1b_fold = np.einsum("km,tmn->tkn", wu_mat, w1b)            # (3, 2*w1*cin, wo1*cout)
    bup_row = np.tile(up_b, wu)                                 # (wu*cout,)
    b1_eff = np.tile(c1_b, wo1) + bup_row @ w1b.sum(axis=0)     # (wo1*cout,)
    b2_row = np.tile(c2_b, wo2)                                 # (wo2*cout,)

    # Lane/K-pad each tap block to 128 and concatenate the taps along K so the
    # kernel issues a single matmul per conv stage.
    w1_full = np.concatenate(
        [_pad_kn(w1a[t], lx2, n1p) for t in range(3)]
        + [_pad_kn(w1b_fold[t], lx1, n1p) for t in range(3)], axis=0)   # (3*lx2+3*lx1, n1p)
    w2_full = np.concatenate(
        [_pad_kn(w2p[t], n1p, n2p) for t in range(3)], axis=0)          # (3*n1p, n2p)

    b1_full = np.zeros((1, n1p), np.float32); b1_full[0, :b1_eff.size] = b1_eff
    b2_full = np.zeros((1, n2p), np.float32); b2_full[0, :b2_row.size] = b2_row

    return {
        "w1": jnp.asarray(w1_full, COMPUTE_DTYPE),
        "w2": jnp.asarray(w2_full, COMPUTE_DTYPE),
        "b1": jnp.asarray(b1_full, jnp.float32),
        "b2": jnp.asarray(b2_full, jnp.float32),
    }


# ----------------------------------------------------------------------------
# Expand.forward (NCHW in / NCHW out), single fused pallas_call inside
# ----------------------------------------------------------------------------
def expand_forward(x1_nchw, x2_nchw, packed, *, cout):
    n, cin, h1w, w1w = x1_nchw.shape
    _, c2, h2, w2 = x2_nchw.shape
    hu, wu = 2 * h1w, 2 * w1w
    ho1, wo1 = hu - 2, wu - 2
    ho2, wo2 = hu - 4, wu - 4

    lx2 = _round_up(wu * c2, LANE)
    lx1 = _round_up(2 * w1w * cin, LANE)
    n1p = packed["w1"].shape[1]
    n2p = packed["w2"].shape[1]
    assert packed["w1"].shape[0] == 3 * lx2 + 3 * lx1
    assert packed["w2"].shape[0] == 3 * n1p

    # --- layout plumbing (pure XLA on the kernel INPUTS, tiny) --------------
    # x2: NCHW -> NHWC, zero-pad exactly like F.pad(x2, (dx//2, dy//2, dx//2, dy//2))
    # (W: left=dx//2, right=dy//2; H: top=dx//2, bottom=dy//2), pack (row, W*C),
    # lane-pad to 128 and cast to bf16 (halves the HBM->VMEM DMA bytes).
    dx = hu - h2
    dy = wu - w2
    x2 = jnp.transpose(x2_nchw, (0, 2, 3, 1))
    x2p = jnp.pad(x2, ((0, 0), (dx // 2, dy // 2), (dx // 2, dy // 2), (0, 0)))
    assert x2p.shape[1] == hu and x2p.shape[2] == wu, "concat needs matching spatial dims"
    x2p = x2p.reshape(n, hu, wu * c2)
    if lx2 > wu * c2:
        x2p = jnp.pad(x2p, ((0, 0), (0, 0), (0, lx2 - wu * c2)))
    x2p = x2p.astype(COMPUTE_DTYPE)

    # x1: NCHW -> NHWC -> (row, W*Cin), then each row duplicated into an
    # (even, odd) parity pair with a zero K-split so the folded up-conv weight
    # inside conv1 addresses the correct up-sampled rows.
    # (For production Cin, pack the parity into two init-time weights instead
    #  of shipping the zero half — negligible at this Cin.)
    x1 = jnp.transpose(x1_nchw, (0, 2, 3, 1)).reshape(n, h1w, w1w * cin)
    z = jnp.zeros_like(x1)
    x1d = jnp.stack([jnp.concatenate([x1, z], axis=-1),
                     jnp.concatenate([z, x1], axis=-1)], axis=2)
    x1d = x1d.reshape(n, hu, 2 * w1w * cin)
    if lx1 > 2 * w1w * cin:
        x1d = jnp.pad(x1d, ((0, 0), (0, 0), (0, lx1 - 2 * w1w * cin)))
    x1d = x1d.astype(COMPUTE_DTYPE)

    # Batch folding: 2 "parallel" grid steps when the batch is even (keeps both
    # v7x TensorCores busy), otherwise a single step — amortizes the ~0.35us
    # per-grid-step overhead on the single-TC v5e/v6e.
    num_groups = 2 if (n % 2 == 0 and n >= 2) else 1
    npg = n // num_groups

    k1 = 3 * lx2 + 3 * lx1
    k2 = 3 * n1p
    cost = pl.CostEstimate(
        flops=2 * n * (ho1 * k1 * n1p + ho2 * k2 * n2p),
        transcendentals=0,
        bytes_accessed=((x1d.size + x2p.size) * 2
                        + (packed["w1"].size + packed["w2"].size) * 2
                        + (packed["b1"].size + packed["b2"].size) * 4
                        + n * ho2 * n2p * 4),
    )

    kern = functools.partial(_expand_kernel, ho1=ho1, ho2=ho2, npg=npg)
    out_packed = pl.pallas_call(
        kern,
        out_shape=jax.ShapeDtypeStruct((n, ho2, n2p), jnp.float32),
        grid=(num_groups,),
        in_specs=[
            pl.BlockSpec((npg, hu, lx1), lambda g: (g, 0, 0)),
            pl.BlockSpec((npg, hu, lx2), lambda g: (g, 0, 0)),
            pl.BlockSpec(packed["w1"].shape, lambda g: (0, 0)),
            pl.BlockSpec(packed["w2"].shape, lambda g: (0, 0)),
            pl.BlockSpec(packed["b1"].shape, lambda g: (0, 0)),
            pl.BlockSpec(packed["b2"].shape, lambda g: (0, 0)),
        ],
        out_specs=pl.BlockSpec((npg, ho2, n2p), lambda g: (g, 0, 0)),
        compiler_params=pltpu.CompilerParams(
            dimension_semantics=("parallel",),      # v7x: the 2 TCs split the groups
            vmem_limit_bytes=32 * 1024 * 1024),     # explicit budget, safe on all gens
        cost_estimate=cost,
    )(x1d, x2p, packed["w1"], packed["w2"], packed["b1"], packed["b2"])

    # strip the lane padding and unpack (row, W*C) -> NCHW once, at the end
    out = out_packed[..., :wo2 * cout].reshape(n, ho2, wo2, cout)
    return jnp.transpose(out, (0, 3, 1, 2))


expand_forward_jit = jax.jit(expand_forward, static_argnames=("cout",))


# ----------------------------------------------------------------------------
# Pure-JAX float32 reference (lax convolutions) for verification
# ----------------------------------------------------------------------------
def reference_forward(x1, x2, params):
    n, _, h, w = x1.shape
    cout = params["up_w"].shape[1]
    up = jnp.einsum("ncij,cdab->ndiajb", x1, params["up_w"]).reshape(n, cout, 2 * h, 2 * w)
    up = up + params["up_b"][None, :, None, None]

    dx = up.shape[2] - x2.shape[2]
    dy = up.shape[3] - x2.shape[3]
    x2p = jnp.pad(x2, ((0, 0), (0, 0), (dx // 2, dy // 2), (dx // 2, dy // 2)))
    x12 = jnp.concatenate([x2p, up], axis=1)

    dn = ("NCHW", "OIHW", "NCHW")
    h_ = lax.conv_general_dilated(x12, params["c1_w"], (1, 1), "VALID", dimension_numbers=dn)
    h_ = jax.nn.relu(h_ + params["c1_b"][None, :, None, None])
    h_ = lax.conv_general_dilated(h_, params["c2_w"], (1, 1), "VALID", dimension_numbers=dn)
    h_ = jax.nn.relu(h_ + params["c2_b"][None, :, None, None])
    return h_


# ----------------------------------------------------------------------------
if __name__ == "__main__":
    in_ch, out_ch = 8, 4
    batch = 4                    # even -> 2 parallel groups of 2 images each
    key = jax.random.PRNGKey(0)
    ks = jax.random.split(key, 8)

    params = {
        # ConvTranspose2d(in_ch, out_ch, 2, 2): weight (Cin, Cout, 2, 2)
        "up_w": 0.1 * jax.random.normal(ks[0], (in_ch, out_ch, 2, 2), jnp.float32),
        "up_b": 0.1 * jax.random.normal(ks[1], (out_ch,), jnp.float32),
        # DoubleConvolution(in_ch, out_ch): Conv2d(in_ch, out_ch, 3), Conv2d(out_ch, out_ch, 3)
        "c1_w": 0.1 * jax.random.normal(ks[2], (out_ch, in_ch, 3, 3), jnp.float32),
        "c1_b": 0.1 * jax.random.normal(ks[3], (out_ch,), jnp.float32),
        "c2_w": 0.1 * jax.random.normal(ks[4], (out_ch, out_ch, 3, 3), jnp.float32),
        "c2_b": 0.1 * jax.random.normal(ks[5], (out_ch,), jnp.float32),
    }

    # x1: pre-upsample feature map; x2: skip connection from the contracting path.
    x1 = jax.random.normal(ks[6], (batch, in_ch, 8, 8), jnp.float32)     # up-conv -> (b,4,16,16)
    x2 = jax.random.normal(ks[7], (batch, out_ch, 12, 12), jnp.float32)  # padded  -> (b,4,16,16)

    packed = prepare_params(params, h1=x1.shape[2], w1=x1.shape[3])      # init-time packing

    out = jax.block_until_ready(expand_forward_jit(x1, x2, packed, cout=out_ch))
    ref = jax.block_until_ready(reference_forward(x1, x2, params))

    assert out.shape == (batch, out_ch, 12, 12), out.shape
    # bf16 MXU operands (and bf16-folded up-conv weights) + f32 accumulation
    # vs. a pure-f32 reference.
    tol = 1e-4 if COMPUTE_DTYPE == jnp.float32 else 5e-2
    np.testing.assert_allclose(np.asarray(out), np.asarray(ref), rtol=tol, atol=tol)
    print("KERNEL_OK")
</pallas_src>

<mosaic_0001>
module attributes {stable_mosaic.version = 11 : i64} {
  func.func @_expand_kernel(%arg0: i32, %arg1: memref<2x16x128xbf16, #tpu.memory_space<vmem>>, %arg2: memref<2x16x128xbf16, #tpu.memory_space<vmem>>, %arg3: memref<768x128xbf16, #tpu.memory_space<vmem>>, %arg4: memref<384x128xbf16, #tpu.memory_space<vmem>>, %arg5: memref<1x128xf32, #tpu.memory_space<vmem>>, %arg6: memref<1x128xf32, #tpu.memory_space<vmem>>, %arg7: memref<2x12x128xf32, #tpu.memory_space<vmem>>) attributes {dimension_semantics = [#tpu.dimension_semantics<parallel>], iteration_bounds = array<i64: 2>, scalar_prefetch = 0 : i64, scratch_operands = 0 : i64, tpu.core_type = #tpu.core_type<tc>, window_params = [{transform_indices = @transform_0, window_bounds = array<i64: 2, 16, 128>}, {transform_indices = @transform_1, window_bounds = array<i64: 2, 16, 128>}, {pipeline_mode = #tpu.pipeline_mode<synchronous>, transform_indices = @transform_2, window_bounds = array<i64: 768, 128>}, {pipeline_mode = #tpu.pipeline_mode<synchronous>, transform_indices = @transform_3, window_bounds = array<i64: 384, 128>}, {pipeline_mode = #tpu.pipeline_mode<synchronous>, transform_indices = @transform_4, window_bounds = array<i64: 1, 128>}, {pipeline_mode = #tpu.pipeline_mode<synchronous>, transform_indices = @transform_5, window_bounds = array<i64: 1, 128>}, {transform_indices = @transform_6, window_bounds = array<i64: 2, 12, 128>}]} {
    %c0 = arith.constant 0 : index
    %c0_0 = arith.constant 0 : index
    %0 = vector.load %arg3[%c0, %c0_0] : memref<768x128xbf16, #tpu.memory_space<vmem>>, vector<768x128xbf16>
    %c0_1 = arith.constant 0 : index
    %c0_2 = arith.constant 0 : index
    %1 = vector.load %arg4[%c0_1, %c0_2] : memref<384x128xbf16, #tpu.memory_space<vmem>>, vector<384x128xbf16>
    %c0_3 = arith.constant 0 : index
    %c0_4 = arith.constant 0 : index
    %2 = vector.load %arg5[%c0_3, %c0_4] : memref<1x128xf32, #tpu.memory_space<vmem>>, vector<1x128xf32>
    %c0_5 = arith.constant 0 : index
    %c0_6 = arith.constant 0 : index
    %3 = vector.load %arg6[%c0_5, %c0_6] : memref<1x128xf32, #tpu.memory_space<vmem>>, vector<1x128xf32>
    %c0_7 = arith.constant 0 : index
    %c0_8 = arith.constant 0 : index
    %c0_9 = arith.constant 0 : index
    %4 = vector.load %arg2[%c0_7, %c0_8, %c0_9] : memref<2x16x128xbf16, #tpu.memory_space<vmem>>, vector<1x16x128xbf16>
    %5 = vector.shape_cast %4 : vector<1x16x128xbf16> to vector<16x128xbf16>
    %c0_10 = arith.constant 0 : index
    %c0_11 = arith.constant 0 : index
    %c0_12 = arith.constant 0 : index
    %6 = vector.load %arg1[%c0_10, %c0_11, %c0_12] : memref<2x16x128xbf16, #tpu.memory_space<vmem>>, vector<1x16x128xbf16>
    %7 = vector.shape_cast %6 : vector<1x16x128xbf16> to vector<16x128xbf16>
    %8 = vector.extract_strided_slice %5 {offsets = [0, 0], sizes = [14, 128], strides = [1, 1]} : vector<16x128xbf16> to vector<14x128xbf16>
    %9 = vector.extract_strided_slice %5 {offsets = [1, 0], sizes = [14, 128], strides = [1, 1]} : vector<16x128xbf16> to vector<14x128xbf16>
    %10 = vector.extract_strided_slice %5 {offsets = [2, 0], sizes = [14, 128], strides = [1, 1]} : vector<16x128xbf16> to vector<14x128xbf16>
    %11 = vector.extract_strided_slice %7 {offsets = [0, 0], sizes = [14, 128], strides = [1, 1]} : vector<16x128xbf16> to vector<14x128xbf16>
    %12 = vector.extract_strided_slice %7 {offsets = [1, 0], sizes = [14, 128], strides = [1, 1]} : vector<16x128xbf16> to vector<14x128xbf16>
    %13 = vector.extract_strided_slice %7 {offsets = [2, 0], sizes = [14, 128], strides = [1, 1]} : vector<16x128xbf16> to vector<14x128xbf16>
    %14 = tpu.concatenate %8, %9, %10, %11, %12, %13 in 1 : vector<14x128xbf16>, vector<14x128xbf16>, vector<14x128xbf16>, vector<14x128xbf16>, vector<14x128xbf16>, vector<14x128xbf16> -> vector<14x768xbf16>
    %cst = arith.constant dense<0.000000e+00> : vector<14x128xf32>
    %15 = tpu.matmul %14, %0, %cst {dimension_numbers = #tpu.dot_dimension_numbers<[1], [0], [0], [1], [0, 0, 1, 1], [], []>} : vector<14x768xbf16>, vector<768x128xbf16>, vector<14x128xf32> -> vector<14x128xf32>
    %16 = vector.broadcast %2 : vector<1x128xf32> to vector<14x128xf32>
    %17 = arith.addf %15, %16 : vector<14x128xf32>
    %cst_13 = arith.constant 0.000000e+00 : f32
    %18 = vector.broadcast %cst_13 : f32 to vector<14x128xf32>
    %19 = arith.maximumf %17, %18 : vector<14x128xf32>
    %20 = arith.truncf %19 : vector<14x128xf32> to vector<14x128xbf16>
    %21 = vector.extract_strided_slice %20 {offsets = [0, 0], sizes = [12, 128], strides = [1, 1]} : vector<14x128xbf16> to vector<12x128xbf16>
    %22 = vector.extract_strided_slice %20 {offsets = [1, 0], sizes = [12, 128], strides = [1, 1]} : vector<14x128xbf16> to vector<12x128xbf16>
    %23 = vector.extract_strided_slice %20 {offsets = [2, 0], sizes = [12, 128], strides = [1, 1]} : vector<14x128xbf16> to vector<12x128xbf16>
    %24 = tpu.concatenate %21, %22, %23 in 1 : vector<12x128xbf16>, vector<12x128xbf16>, vector<12x128xbf16> -> vector<12x384xbf16>
    %cst_14 = arith.constant dense<0.000000e+00> : vector<12x128xf32>
    %25 = tpu.matmul %24, %1, %cst_14 {dimension_numbers = #tpu.dot_dimension_numbers<[1], [0], [0], [1], [0, 0, 1, 1], [], []>} : vector<12x384xbf16>, vector<384x128xbf16>, vector<12x128xf32> -> vector<12x128xf32>
    %26 = vector.broadcast %3 : vector<1x128xf32> to vector<12x128xf32>
    %27 = arith.addf %25, %26 : vector<12x128xf32>
    %cst_15 = arith.constant 0.000000e+00 : f32
    %28 = vector.broadcast %cst_15 : f32 to vector<12x128xf32>
    %29 = arith.maximumf %27, %28 : vector<12x128xf32>
    %c0_16 = arith.constant 0 : index
    %c0_17 = arith.constant 0 : index
    %c0_18 = arith.constant 0 : index
    %30 = vector.load %arg7[%c0_16, %c0_17, %c0_18] : memref<2x12x128xf32, #tpu.memory_space<vmem>>, vector<1x12x128xf32>
    %31 = vector.shape_cast %30 : vector<1x12x128xf32> to vector<12x128xf32>
    %32 = vector.shape_cast %29 : vector<12x128xf32> to vector<1x12x128xf32>
    tpu.vector_store %arg7[%c0_16, %c0_17, %c0_18], %32 {strides = array<i32>} : memref<2x12x128xf32, #tpu.memory_space<vmem>>, vector<1x12x128xf32>,
    %c1 = arith.constant 1 : index
    %c0_19 = arith.constant 0 : index
    %c0_20 = arith.constant 0 : index
    %33 = vector.load %arg2[%c1, %c0_19, %c0_20] : memref<2x16x128xbf16, #tpu.memory_space<vmem>>, vector<1x16x128xbf16>
    %34 = vector.shape_cast %33 : vector<1x16x128xbf16> to vector<16x128xbf16>
    %c1_21 = arith.constant 1 : index
    %c0_22 = arith.constant 0 : index
    %c0_23 = arith.constant 0 : index
    %35 = vector.load %arg1[%c1_21, %c0_22, %c0_23] : memref<2x16x128xbf16, #tpu.memory_space<vmem>>, vector<1x16x128xbf16>
    %36 = vector.shape_cast %35 : vector<1x16x128xbf16> to vector<16x128xbf16>
    %37 = vector.extract_strided_slice %34 {offsets = [0, 0], sizes = [14, 128], strides = [1, 1]} : vector<16x128xbf16> to vector<14x128xbf16>
    %38 = vector.extract_strided_slice %34 {offsets = [1, 0], sizes = [14, 128], strides = [1, 1]} : vector<16x128xbf16> to vector<14x128xbf16>
    %39 = vector.extract_strided_slice %34 {offsets = [2, 0], sizes = [14, 128], strides = [1, 1]} : vector<16x128xbf16> to vector<14x128xbf16>
    %40 = vector.extract_strided_slice %36 {offsets = [0, 0], sizes = [14, 128], strides = [1, 1]} : vector<16x128xbf16> to vector<14x128xbf16>
    %41 = vector.extract_strided_slice %36 {offsets = [1, 0], sizes = [14, 128], strides = [1, 1]} : vector<16x128xbf16> to vector<14x128xbf16>
    %42 = vector.extract_strided_slice %36 {offsets = [2, 0], sizes = [14, 128], strides = [1, 1]} : vector<16x128xbf16> to vector<14x128xbf16>
    %43 = tpu.concatenate %37, %38, %39, %40, %41, %42 in 1 : vector<14x128xbf16>, vector<14x128xbf16>, vector<14x128xbf16>, vector<14x128xbf16>, vector<14x128xbf16>, vector<14x128xbf16> -> vector<14x768xbf16>
    %cst_24 = arith.constant dense<0.000000e+00> : vector<14x128xf32>
    %44 = tpu.matmul %43, %0, %cst_24 {dimension_numbers = #tpu.dot_dimension_numbers<[1], [0], [0], [1], [0, 0, 1, 1], [], []>} : vector<14x768xbf16>, vector<768x128xbf16>, vector<14x128xf32> -> vector<14x128xf32>
    %45 = vector.broadcast %2 : vector<1x128xf32> to vector<14x128xf32>
    %46 = arith.addf %44, %45 : vector<14x128xf32>
    %cst_25 = arith.constant 0.000000e+00 : f32
    %47 = vector.broadcast %cst_25 : f32 to vector<14x128xf32>
    %48 = arith.maximumf %46, %47 : vector<14x128xf32>
    %49 = arith.truncf %48 : vector<14x128xf32> to vector<14x128xbf16>
    %50 = vector.extract_strided_slice %49 {offsets = [0, 0], sizes = [12, 128], strides = [1, 1]} : vector<14x128xbf16> to vector<12x128xbf16>
    %51 = vector.extract_strided_slice %49 {offsets = [1, 0], sizes = [12, 128], strides = [1, 1]} : vector<14x128xbf16> to vector<12x128xbf16>
    %52 = vector.extract_strided_slice %49 {offsets = [2, 0], sizes = [12, 128], strides = [1, 1]} : vector<14x128xbf16> to vector<12x128xbf16>
    %53 = tpu.concatenate %50, %51, %52 in 1 : vector<12x128xbf16>, vector<12x128xbf16>, vector<12x128xbf16> -> vector<12x384xbf16>
    %cst_26 = arith.constant dense<0.000000e+00> : vector<12x128xf32>
    %54 = tpu.matmul %53, %1, %cst_26 {dimension_numbers = #tpu.dot_dimension_numbers<[1], [0], [0], [1], [0, 0, 1, 1], [], []>} : vector<12x384xbf16>, vector<384x128xbf16>, vector<12x128xf32> -> vector<12x128xf32>
    %55 = vector.broadcast %3 : vector<1x128xf32> to vector<12x128xf32>
    %56 = arith.addf %54, %55 : vector<12x128xf32>
    %cst_27 = arith.constant 0.000000e+00 : f32
    %57 = vector.broadcast %cst_27 : f32 to vector<12x128xf32>
    %58 = arith.maximumf %56, %57 : vector<12x128xf32>
    %c1_28 = arith.constant 1 : index
    %c0_29 = arith.constant 0 : index
    %c0_30 = arith.constant 0 : index
    %59 = vector.load %arg7[%c1_28, %c0_29, %c0_30] : memref<2x12x128xf32, #tpu.memory_space<vmem>>, vector<1x12x128xf32>
    %60 = vector.shape_cast %59 : vector<1x12x128xf32> to vector<12x128xf32>
    %61 = vector.shape_cast %58 : vector<12x128xf32> to vector<1x12x128xf32>
    tpu.vector_store %arg7[%c1_28, %c0_29, %c0_30], %61 {strides = array<i32>} : memref<2x12x128xf32, #tpu.memory_space<vmem>>, vector<1x12x128xf32>,
    return
  }
  func.func @transform_0(%arg0: i32) -> (i32, i32, i32) {
    %c0_i32 = arith.constant 0 : i32
    %c0_i32_0 = arith.constant 0 : i32
    %c0_i32_1 = arith.constant 0 : i32
    return %arg0, %c0_i32, %c0_i32_0 : i32, i32, i32
  }
  func.func @transform_1(%arg0: i32) -> (i32, i32, i32) {
    %c0_i32 = arith.constant 0 : i32
    %c0_i32_0 = arith.constant 0 : i32
    %c0_i32_1 = arith.constant 0 : i32
    return %arg0, %c0_i32, %c0_i32_0 : i32, i32, i32
  }
  func.func @transform_2(%arg0: i32) -> (i32, i32) {
    %c0_i32 = arith.constant 0 : i32
    %c0_i32_0 = arith.constant 0 : i32
    %c0_i32_1 = arith.constant 0 : i32
    return %c0_i32, %c0_i32_0 : i32, i32
  }
  func.func @transform_3(%arg0: i32) -> (i32, i32) {
    %c0_i32 = arith.constant 0 : i32
    %c0_i32_0 = arith.constant 0 : i32
    %c0_i32_1 = arith.constant 0 : i32
    return %c0_i32, %c0_i32_0 : i32, i32
  }
  func.func @transform_4(%arg0: i32) -> (i32, i32) {
    %c0_i32 = arith.constant 0 : i32
    %c0_i32_0 = arith.constant 0 : i32
    %c0_i32_1 = arith.constant 0 : i32
    return %c0_i32, %c0_i32_0 : i32, i32
  }
  func.func @transform_5(%arg0: i32) -> (i32, i32) {
    %c0_i32 = arith.constant 0 : i32
    %c0_i32_0 = arith.constant 0 : i32
    %c0_i32_1 = arith.constant 0 : i32
    return %c0_i32, %c0_i32_0 : i32, i32
  }
  func.func @transform_6(%arg0: i32) -> (i32, i32, i32) {
    %c0_i32 = arith.constant 0 : i32
    %c0_i32_0 = arith.constant 0 : i32
    %c0_i32_1 = arith.constant 0 : i32
    return %arg0, %c0_i32, %c0_i32_0 : i32, i32, i32
  }
}

</mosaic_0001>

<bundles_post_ra>
// kernel: expand_forward.1
= control target key start
LH: loop header
LB: loop body
LE: loop exit
PB: predicated region body
PF: predicated region fallthrough
CT: control target
= control target key end

     0   :  { %s1772_s21 = smov 0   ;;  %s2314_s0 = inlined_call_operand.vmem [shape: bf16[4,16,128], index: 0, kind: input, shape index: {}]   ;;  %s2315_s1 = inlined_call_operand.vmem [shape: bf16[4,16,128], index: 1, kind: input, shape index: {}]   ;;  %s2316_s2 = inlined_call_operand.vmem [shape: bf16[768,128], index: 2, kind: input, shape index: {}]   ;;  %s2317_s3 = inlined_call_operand.vmem [shape: bf16[384,128], index: 3, kind: input, shape index: {}]   ;;  %s2318_s4 = inlined_call_operand.vmem [shape: f32[1,128], index: 4, kind: input, shape index: {}]   ;;  %s2319_s5 = inlined_call_operand.vmem [shape: f32[1,128], index: 5, kind: input, shape index: {}]   ;;  %s2320_s6 = inlined_call_operand.vmem [shape: f32[4,12,128], index: 6, kind: output, shape index: {}]  }
   0x1 LB: > { %s1314_s22 = sadd.s32 4294967295, %s1735_s21   ;;  %p1318_p0 = scmp.ge.s32.totalorder %s1735_s21, 1  ;;  %s1735_s21 = sphi %s1772_s21, %s16_s21  }
   0x2   : > { %p226_p1 = scmp.lt.s32.totalorder %s1735_s21, 3 }
   0x4   : > { %p227_p2 = pnand %p1318_p0, %p226_p1 }
   0x5   : > { %s1319_s29 = sshll.u32 (!%p227_p2), %s1314_s22, 1 }
   0x6   : > { %230 = sbr.rel (%p227_p2) target bundleno = 552 (0x228), region = 44  ;;  %p265_p3 = scmp.lt.s32.totalorder (!%p227_p2), %s1319_s29, 3 }
   0xb   : > { %v1783_v0 = vld [vmem:[%s2316_s2 + $0x38] sm:$0xff]  ;;  %v1805_v4 = vld [vmem:[%s2316_s2 + $0x30] sm:$0xff]  ;;  %v1829_v8 = vld [vmem:[%s2316_s2 + $0x28] sm:$0xff]  ;;  %s2322_s29 = smov (!%p265_p3, %s1319_s29), 3 }
   0xc   : > { %v1788_v1 = vld [vmem:[%s2316_s2 + $0x78] sm:$0xff]  ;;  %758 = vmatpush.bf16.msra.mxu0 %v1783_v0  ;;  %v1810_v5 = vld [vmem:[%s2316_s2 + $0x70] sm:$0xff]  ;;  %v1834_v9 = vld [vmem:[%s2316_s2 + $0x68] sm:$0xff]  ;;  %s1640_s10 = sshll.u32 %s2322_s29, 3  ;;  %s1642_s8 = sshll.u32 %s2322_s29, 4 }
   0xd   : > { %v1793_v2 = vld [vmem:[%s2316_s2 + $0xb8] sm:$0xff]  ;;  %772 = vmatpush.bf16.msra.mxu1 %v1788_v1  ;;  %v1817_v6 = vld [vmem:[%s2316_s2 + $0xb0] sm:$0xff]  ;;  %v1841_v10 = vld [vmem:[%s2316_s2 + $0xa8] sm:$0xff]  ;;  %s1897_s19 = scalar_lea.vmem %s2315_s1, %s1640_s10  ;;  %s1994_s11 = scalar_lea.vmem %s2314_s0, %s1640_s10 }
   0xe   : > { %v1798_v3 = vld [vmem:[%s2316_s2 + $0xf8] sm:$0xff]  ;;  %786 = vmatpush.bf16.msra.mxu2 %v1793_v2  ;;  %v1822_v7 = vld [vmem:[%s2316_s2 + $0xf0] sm:$0xff]  ;;  %v1846_v11 = vld [vmem:[%s2316_s2 + $0xe8] sm:$0xff]  ;;  %s2300_s13 = scalar_lea.vmem %s2320_s6, %s1642_s8 }
   0xf   : > { %800 = vmatpush.bf16.msra.mxu3 %v1798_v3  ;;  %v1855_v12 = vld [vmem:[%s2316_s2 + $0x20] sm:$0xff]  ;;  %v1880_v16 = vld [vmem:[%s2316_s2 + $0x18] sm:$0xff]  ;;  %v1912_v21 = vld [vmem:[%s2316_s2 + $0x10] sm:$0xff] }
  0x10   : > { %759 = vmatpush.bf16.msra.mxu0 %v1805_v4  ;;  %v1860_v13 = vld [vmem:[%s2316_s2 + $0x60] sm:$0xff]  ;;  %v1885_v17 = vld [vmem:[%s2316_s2 + $0x58] sm:$0xff]  ;;  %v1917_v22 = vld [vmem:[%s2316_s2 + $0x50] sm:$0xff] }
  0x11   : > { %773 = vmatpush.bf16.msra.mxu1 %v1810_v5  ;;  %v1867_v14 = vld [vmem:[%s2316_s2 + $0xa0] sm:$0xff]  ;;  %v1890_v18 = vld [vmem:[%s2316_s2 + $0x98] sm:$0xff]  ;;  %v1924_v23 = vld [vmem:[%s2316_s2 + $0x90] sm:$0xff] }
  0x12   : > { %787 = vmatpush.bf16.msra.mxu2 %v1817_v6  ;;  %v1872_v15 = vld [vmem:[%s2316_s2 + $0xe0] sm:$0xff]  ;;  %v1904_v19 = vld [vmem:[%s2316_s2 + $0xd8] sm:$0xff]  ;;  %v1929_v24 = vld [vmem:[%s2316_s2 + $0xd0] sm:$0xff] }
  0x13   : > { %801 = vmatpush.bf16.msra.mxu3 %v1822_v7  ;;  %v1715_v20 = vld [vmem:[%s1897_s19] sm:$0xff]  ;;  %v1936_v26 = vld [vmem:[%s2316_s2 + $0x8] sm:$0xff]  ;;  %v1972_v34 = vld [vmem:[%s2316_s2 + $0x138] sm:$0xff] }
  0x14   : > { %760 = vmatpush.bf16.msra.mxu0 %v1829_v8  ;;  %v444_v25 = vshll.u32 %v1715_v20, 16  ;;  %v1941_v27 = vld [vmem:[%s2316_s2 + $0x48] sm:$0xff]  ;;  %v442_v30 = vshrl.u32 %v1715_v20, 16  ;;  %v1960_v32 = vld [vmem:[%s2316_s2] sm:$0xff]  ;;  %v1977_v35 = vld [vmem:[%s2316_s2 + $0x178] sm:$0xff]  ;;  %v449_v42 = vrot.slane %v1715_v20, 1 }
  0x15   : > { %774 = vmatpush.bf16.msra.mxu1 %v1834_v9  ;;  %v1948_v28 = vld [vmem:[%s2316_s2 + $0x88] sm:$0xff]  ;;  %v1965_v33 = vld [vmem:[%s2316_s2 + $0x40] sm:$0xff]  ;;  %v2001_v39 = vld [vmem:[%s2317_s3 + $0x38] sm:$0xff] }
  0x16   : > { %788 = vmatpush.bf16.msra.mxu2 %v1841_v10  ;;  %v1953_v29 = vld [vmem:[%s2316_s2 + $0xc8] sm:$0xff]  ;;  %v446_v31 = vrot.slane %v444_v25, 1  ;;  %v1982_v36 = vld [vmem:[%s2316_s2 + $0x80] sm:$0xff]  ;;  %v1681_v40 = vld [vmem:[%s2316_s2 + $0x130] sm:$0xff] }
  0x17   : > { %802 = vmatpush.bf16.msra.mxu3 %v1846_v11  ;;  %v1987_v37 = vld [vmem:[%s2316_s2 + $0xc0] sm:$0xff]  ;;  %v2011_v41 = vld [vmem:[%s2316_s2 + $0x170] sm:$0xff]  ;;  %v1680_v45 = vld [vmem:[%s2316_s2 + $0x128] sm:$0xff] }
  0x18   : > { %761 = vmatpush.bf16.msra.mxu0 %v1855_v12  ;;  %v447_v38 = vor.u32 %v446_v31, %v442_v30  ;;  %v1716_v43 = vld [vmem:[%s1994_s11] sm:$0xff]  ;;  %v2020_v44 = vld [vmem:[%s2317_s3 + $0x30] sm:$0xff]  ;;  %v2029_v46 = vld [vmem:[%s2316_s2 + $0x168] sm:$0xff] }
  0x19   : > { %775 = vmatpush.bf16.msra.mxu1 %v1860_v13  ;;  %v2035_v47 = vld [vmem:[%s2317_s3 + $0x28] sm:$0xff]  ;;  %v1679_v48 = vld [vmem:[%s2316_s2 + $0x120] sm:$0xff]  ;;  %v1678_v50 = vld [vmem:[%s2316_s2 + $0x118] sm:$0xff]  ;;  %v460_v54 = vshll.u32 %v1716_v43, 16  ;;  %v458_v57 = vshrl.u32 %v1716_v43, 16  ;;  %v465_v62 = vrot.slane %v1716_v43, 1 }
  0x1a   : > { %789 = vmatpush.bf16.msra.mxu2 %v1867_v14  ;;  %v2044_v49 = vld [vmem:[%s2316_s2 + $0x160] sm:$0xff]  ;;  %v2054_v51 = vld [vmem:[%s2316_s2 + $0x158] sm:$0xff]  ;;  %v1677_v52 = vld [vmem:[%s2316_s2 + $0x110] sm:$0xff] }
  0x1b   : > { %803 = vmatpush.bf16.msra.mxu3 %v1872_v15  ;;  %v2063_v53 = vld [vmem:[%s2316_s2 + $0x150] sm:$0xff]  ;;  %v1676_v55 = vld [vmem:[%s2316_s2 + $0x108] sm:$0xff]  ;;  %v462_v58 = vrot.slane %v460_v54, 1  ;;  %v1675_v59 = vld [vmem:[%s2316_s2 + $0x100] sm:$0xff] }
  0x1c   : > { %762 = vmatpush.bf16.msra.mxu0 %v1880_v16  ;;  %v2072_v56 = vld [vmem:[%s2316_s2 + $0x148] sm:$0xff]  ;;  %v2081_v60 = vld [vmem:[%s2316_s2 + $0x140] sm:$0xff]  ;;  %v2143_v25 = vld [vmem:[%s2317_s3 + $0xb0] sm:$0xff] }
  0x1d   : > { %776 = vmatpush.bf16.msra.mxu1 %v1885_v17  ;;  %v463_v61 = vor.u32 %v462_v58, %v458_v57  ;;  %v2096_v63 = vld [vmem:[%s2317_s3 + $0x20] sm:$0xff]  ;;  %v2160_v31 = vld [vmem:[%s2317_s3 + $0xa8] sm:$0xff] }
  0x1e   : > { %790 = vmatpush.bf16.msra.mxu2 %v1890_v18  ;;  %v2155_v30 = vld [vmem:[%s2317_s3 + $0x60] sm:$0xff] }
  0x1f   : > { %804 = vmatpush.bf16.msra.mxu3 %v1904_v19 }
  0x20   : > { %763 = vmatpush.bf16.msra.mxu0 %v1912_v21 }
  0x21   : > { %777 = vmatpush.bf16.msra.mxu1 %v1917_v22 }
  0x22   : > { %791 = vmatpush.bf16.msra.mxu2 %v1924_v23 }
  0x23   : > { %805 = vmatpush.bf16.msra.mxu3 %v1929_v24 }
  0x24   : > { %764 = vmatpush.bf16.msra.mxu0 %v1936_v26 }
  0x25   : > { %778 = vmatpush.bf16.msra.mxu1 %v1941_v27 }
  0x26   : > { %792 = vmatpush.bf16.msra.mxu2 %v1948_v28 }
  0x27   : > { %806 = vmatpush.bf16.msra.mxu3 %v1953_v29 }
  0x28   : > { %765 = vmatpush.bf16.msra.mxu0 %v1960_v32 }
  0x29   : > { %779 = vmatpush.bf16.msra.mxu1 %v1965_v33 }
  0x2a   : > { %793 = vmatpush.bf16.msra.mxu2 %v1982_v36 }
  0x2b   : > { %807 = vmatpush.bf16.msra.mxu3 %v1987_v37  ;;  %766 = vmatmul.bf16.vlgmr.msra.gmra.mxu0 %v1715_v20  ;;  %v2131_v20 = vld [vmem:[%s2317_s3 + $0x8] sm:$0xff] }
  0x2c   : > { %814 = vmatpush.bf16.msrb.mxu0 %v1972_v34  ;;  %780 = vmatmul.bf16.vlgmr.msra.gmra.mxu1 %v447_v38  ;;  %v2188_v38 = vld [vmem:[%s2317_s3 + $0x98] sm:$0xff] }
  0x2d   : > { %828 = vmatpush.bf16.msrb.mxu1 %v1977_v35  ;;  %794 = vmatmul.bf16.vlgmr.msra.gmra.mxu2 %v449_v42 }
  0x2e   : > { %1009 = vmatpush.bf16.msrb.mxu2 %v2001_v39  ;;  %808 = vmatmul.bf16.vlgmr.msra.gmra.mxu3 %v1716_v43 }
  0x30   : > { %815 = vmatpush.bf16.msrb.mxu0 %v1681_v40 }
  0x31   : > { %829 = vmatpush.bf16.msrb.mxu1 %v2011_v41 }
  0x32   : > { %1010 = vmatpush.bf16.msrb.mxu2 %v2020_v44 }
  0x34   : > { %816 = vmatpush.bf16.msrb.mxu0 %v1680_v45 }
  0x35   : > { %830 = vmatpush.bf16.msrb.mxu1 %v2029_v46 }
  0x36   : > { %1011 = vmatpush.bf16.msrb.mxu2 %v2035_v47 }
  0x38   : > { %817 = vmatpush.bf16.msrb.mxu0 %v1679_v48 }
  0x39   : > { %831 = vmatpush.bf16.msrb.mxu1 %v2044_v49 }
  0x3a   : > { %1012 = vmatpush.bf16.msrb.mxu2 %v2096_v63 }
  0x3c   : > { %818 = vmatpush.bf16.msrb.mxu0 %v1678_v50 }
  0x3d   : > { %832 = vmatpush.bf16.msrb.mxu1 %v2054_v51 }
  0x40   : > { %819 = vmatpush.bf16.msrb.mxu0 %v1677_v52 }
  0x41   : > { %833 = vmatpush.bf16.msrb.mxu1 %v2063_v53 }
  0x44   : > { %820 = vmatpush.bf16.msrb.mxu0 %v1676_v55 }
  0x45   : > { %834 = vmatpush.bf16.msrb.mxu1 %v2072_v56 }
  0x48   : > { %821 = vmatpush.bf16.msrb.mxu0 %v1675_v59 }
  0x49   : > { %835 = vmatpush.bf16.msrb.mxu1 %v2081_v60 }
  0x4b   : > { %822 = vmatmul.bf16.vlgmr.msrb.gmra.mxu0 %v463_v61  ;;  %v1718_v61 = vld [vmem:[%s1994_s11 + $0x8] sm:$0xff] }
  0x4c   : > { %836 = vmatmul.bf16.vlgmr.msrb.gmra.mxu1 %v465_v62 }
  0x4d   : > { %1093 = vmatpush.bf16.msra.mxu1 %v1783_v0  ;;  %v2102_v0 = vld [vmem:[%s2317_s3 + $0x18] sm:$0xff] }
  0x4e   : > { %1013 = vmatpush.bf16.msrb.mxu2 %v2102_v0 }
  0x51   : > { %1094 = vmatpush.bf16.msra.mxu1 %v1805_v4  ;;  %v2108_v4 = vld [vmem:[%s2317_s3 + $0x78] sm:$0xff] }
  0x52   : > { %1023 = vmatpush.bf16.msrb.mxu3 %v2108_v4 }
  0x55   : > { %1095 = vmatpush.bf16.msra.mxu1 %v1829_v8  ;;  %v2113_v8 = vld [vmem:[%s2317_s3 + $0x10] sm:$0xff] }
  0x56   : > { %1014 = vmatpush.bf16.msrb.mxu2 %v2113_v8 }
  0x59   : > { %1096 = vmatpush.bf16.msra.mxu1 %v1855_v12  ;;  %v2119_v12 = vld [vmem:[%s2317_s3 + $0x70] sm:$0xff] }
  0x5a   : > { %1024 = vmatpush.bf16.msrb.mxu3 %v2119_v12  ;;  %1015 = vmatpush.bf16.msrb.mxu2 %v2131_v20 }
  0x5d   : > { %1097 = vmatpush.bf16.msra.mxu1 %v1880_v16  ;;  %v2124_v16 = vld [vmem:[%s2317_s3 + $0xb8] sm:$0xff] }
  0x5e   : > { %1037 = vmatpush.bf16.msra.mxu0 %v2124_v16 }
  0x61   : > { %1098 = vmatpush.bf16.msra.mxu1 %v1912_v21  ;;  %v2138_v21 = vld [vmem:[%s2317_s3 + $0x68] sm:$0xff] }
  0x62   : > { %1025 = vmatpush.bf16.msrb.mxu3 %v2138_v21  ;;  %1038 = vmatpush.bf16.msra.mxu0 %v2143_v25 }
  0x65   : > { %1099 = vmatpush.bf16.msra.mxu1 %v1936_v26  ;;  %v2148_v26 = vld [vmem:[%s2317_s3] sm:$0xff] }
  0x66   : > { %1016 = vmatpush.bf16.msrb.mxu2 %v2148_v26  ;;  %1026 = vmatpush.bf16.msrb.mxu3 %v2155_v30 }
  0x67   : > { %1039 = vmatpush.bf16.msra.mxu0 %v2160_v31 }
  0x69   : > { %1100 = vmatpush.bf16.msra.mxu1 %v1960_v32  ;;  %v2169_v32 = vld [vmem:[%s2317_s3 + $0x58] sm:$0xff] }
  0x6a   : > { %1107 = vmatpush.bf16.msra.mxu2 %v1788_v1  ;;  %1027 = vmatpush.bf16.msrb.mxu3 %v2169_v32  ;;  %v2183_v1 = vld [vmem:[%s2317_s3 + $0x50] sm:$0xff] }
  0x6d   : > { %1149 = vmatpush.bf16.msrb.mxu1 %v1972_v34  ;;  %v2174_v34 = vld [vmem:[%s2317_s3 + $0xa0] sm:$0xff] }
  0x6e   : > { %1108 = vmatpush.bf16.msra.mxu2 %v1810_v5  ;;  %1040 = vmatpush.bf16.msra.mxu0 %v2174_v34  ;;  %v2196_v5 = vld [vmem:[%s2317_s3 + $0x48] sm:$0xff] }
  0x6f   : > { %1028 = vmatpush.bf16.msrb.mxu3 %v2183_v1 }
  0x71   : > { %1150 = vmatpush.bf16.msrb.mxu1 %v1681_v40  ;;  %v2214_v40 = vld [vmem:[%s2317_s3 + $0x88] sm:$0xff] }
  0x72   : > { %1109 = vmatpush.bf16.msra.mxu2 %v1834_v9  ;;  %1041 = vmatpush.bf16.msra.mxu0 %v2188_v38  ;;  %v2201_v9 = vld [vmem:[%s2317_s3 + $0x90] sm:$0xff] }
  0x73   : > { %1029 = vmatpush.bf16.msrb.mxu3 %v2196_v5 }
  0x75   : > { %1151 = vmatpush.bf16.msrb.mxu1 %v1680_v45  ;;  %v2228_v45 = vld [vmem:[%s2318_s4] ss:$0 sm:$0xff] }
  0x76   : > { %1110 = vmatpush.bf16.msra.mxu2 %v1860_v13  ;;  %1042 = vmatpush.bf16.msra.mxu0 %v2201_v9  ;;  %v2209_v13 = vld [vmem:[%s2317_s3 + $0x40] sm:$0xff] }
  0x77   : > { %1030 = vmatpush.bf16.msrb.mxu3 %v2209_v13 }
  0x79   : > { %1152 = vmatpush.bf16.msrb.mxu1 %v1679_v48 }
  0x7a   : > { %1111 = vmatpush.bf16.msra.mxu2 %v1885_v17  ;;  %1043 = vmatpush.bf16.msra.mxu0 %v2214_v40  ;;  %v2223_v17 = vld [vmem:[%s2317_s3 + $0x80] sm:$0xff] }
  0x7b   : > { %1121 = vmatpush.bf16.msra.mxu3 %v1793_v2 }
  0x7d   : > { %1153 = vmatpush.bf16.msrb.mxu1 %v1678_v50 }
  0x7e   : > { %1112 = vmatpush.bf16.msra.mxu2 %v1917_v22  ;;  %1044 = vmatpush.bf16.msra.mxu0 %v2223_v17 }
  0x7f   : > { %1122 = vmatpush.bf16.msra.mxu3 %v1817_v6 }
  0x81   : > { %1154 = vmatpush.bf16.msrb.mxu1 %v1677_v52 }
  0x82   : > { %1135 = vmatpush.bf16.msrb.mxu0 %v1798_v3  ;;  %1113 = vmatpush.bf16.msra.mxu2 %v1941_v27 }
  0x83   : > { %1123 = vmatpush.bf16.msra.mxu3 %v1841_v10  ;;  %v2244_v10 = vld [vmem:[%s1897_s19 + $0x8] sm:$0xff] }
  0x84   : > { %1101 = vmatmul.bf16.vlgmr.msra.gmra.mxu1 %v2244_v10 }
  0x85   : > { %1155 = vmatpush.bf16.msrb.mxu1 %v1676_v55 }
  0x86   : > { %1136 = vmatpush.bf16.msrb.mxu0 %v1822_v7  ;;  %1114 = vmatpush.bf16.msra.mxu2 %v1965_v33 }
  0x87   : > { %1124 = vmatpush.bf16.msra.mxu3 %v1867_v14 }
  0x89   : > { %1156 = vmatpush.bf16.msrb.mxu1 %v1675_v59 }
  0x8a   : > { %1137 = vmatpush.bf16.msrb.mxu0 %v1846_v11 }
  0x8b   : > { %1125 = vmatpush.bf16.msra.mxu3 %v1890_v18 }
  0x8d   : > { %1225 = vmatpush.bf16.msra.mxu1 %v2124_v16 }
  0x8e   : > { %1138 = vmatpush.bf16.msrb.mxu0 %v1872_v15 }
  0x8f   : > { %1126 = vmatpush.bf16.msra.mxu3 %v1924_v23 }
  0x91   : > { %1226 = vmatpush.bf16.msra.mxu1 %v2143_v25 }
  0x92   : > { %1139 = vmatpush.bf16.msrb.mxu0 %v1904_v19 }
  0x93   : > { %1127 = vmatpush.bf16.msra.mxu3 %v1948_v28 }
  0x95   : > { %1227 = vmatpush.bf16.msra.mxu1 %v2160_v31 }
  0x96   : > { %1140 = vmatpush.bf16.msrb.mxu0 %v1929_v24 }
  0x97   : > { %1128 = vmatpush.bf16.msra.mxu3 %v1982_v36 }
  0x99   : > { %1228 = vmatpush.bf16.msra.mxu1 %v2174_v34 }
  0x9a   : > { %1141 = vmatpush.bf16.msrb.mxu0 %v1953_v29 }
  0x9d   : > { %1229 = vmatpush.bf16.msra.mxu1 %v2188_v38 }
  0x9e   : > { %1142 = vmatpush.bf16.msrb.mxu0 %v1987_v37 }
  0xa1   : > { %1230 = vmatpush.bf16.msra.mxu1 %v2201_v9 }
  0xa5   : > { %1231 = vmatpush.bf16.msra.mxu1 %v2214_v40 }
  0xa8   : > { %v767_v42 = vpop.f32.mrf.mxu0 }
  0xa9   : > { %v781_v43 = vpop.f32.mrf.mxu1  ;;  %v768_v2 = vadd.f32 %v2228_v45, %v767_v42  ;;  %v1086_v42 = vshll.u32 %v1718_v61, 16  ;;  %1232 = vmatpush.bf16.msra.mxu1 %v2223_v17 }
  0xab   : > { %v782_v48 = vadd.f32 %v781_v43, %v768_v2  ;;  %v1084_v43 = vshrl.u32 %v1718_v61, 16  ;;  %v1088_v25 = vrot.slane %v1086_v42, 1 }
  0xad   : > { %v1089_v36 = vor.u32 %v1088_v25, %v1084_v43 }
  0xaf   : > { %1157 = vmatmul.bf16.vlgmr.msrb.gmra.mxu1 %v1089_v36 }
  0xb0   : > { %v795_v22 = vpop.f32.mrf.mxu2  ;;  %v769_v50 = vpop.f32.mrf.mxu0 }
  0xb1   : > { %v783_v52 = vpop.f32.mrf.mxu1  ;;  %v809_v3 = vpop.f32.mrf.mxu3  ;;  %v796_v6 = vadd.f32 %v795_v22, %v782_v48  ;;  %v770_v27 = vadd.f32 %v2228_v45, %v769_v50 }
  0xb3   : > { %v810_v7 = vadd.f32 %v809_v3, %v796_v6  ;;  %v784_v54 = vadd.f32 %v783_v52, %v770_v27  ;;  %v1070_v3 = vshll.u32 %v2244_v10, 16 }
  0xb5   : > { %v1072_v38 = vrot.slane %v1070_v3, 1 }
  0xb8   : > { %v797_v33 = vpop.f32.mrf.mxu2 }
  0xb9   : > { %v798_v14 = vadd.f32 %v797_v33, %v784_v54  ;;  %v811_v18 = vpop.f32.mrf.mxu3 }
  0xbb   : > { %v812_v58 = vadd.f32 %v811_v18, %v798_v14 }
  0xc8   : > { %v823_v55 = vpop.f32.mrf.mxu0 }
  0xc9   : > { %v837_v57 = vpop.f32.mrf.mxu1  ;;  %v824_v11 = vadd.f32 %v823_v55, %v810_v7 }
  0xcb   : > { %v838_v15 = vadd.f32 %v837_v57, %v824_v11 }
  0xcd   : > { %v842_v23 = vmax.f32 %v838_v15, 0.0 }
  0xcf   : > { %v844_v24 = vpack.c.bf16 %v842_v23, %v842_v23 }
  0xd0   : > { %v825_v59 = vpop.f32.mrf.mxu0 }
  0xd1   : > { %v826_v19 = vadd.f32 %v825_v59, %v812_v58  ;;  %v839_v62 = vpop.f32.mrf.mxu1  ;;  %v848_v22 = vunpack.c.l.b16 %v844_v24 }
  0xd3   : > { %v840_v16 = vadd.f32 %v839_v62, %v826_v19 }
  0xd5   : > { %v843_v28 = vmax.f32 %v840_v16, 0.0 }
  0xd7   : > { %v845_v2 = vpack.c.bf16 %v843_v28, %v843_v28 }
  0xd9   : > { %v849_v29 = vunpack.c.l.b16 %v845_v2 }
  0xdb   : > { %v850_v48 = vpack.c.b16 %v849_v29, %v848_v22 }
  0xdd   : > { %1017 = vmatmul.bf16.vlgmr.msrb.gmra.mxu2 %v850_v48  ;;  %v860_v31 = vrot.slane %v850_v48, 1  ;;  %v855_v50 = vshll.u32 %v850_v48, 16  ;;  %v853_v37 = vshrl.u32 %v850_v48, 16 }
  0xde   : > { %1163 = vmatpush.bf16.msrb.mxu2 %v1977_v35  ;;  %v1068_v35 = vshrl.u32 %v2244_v10, 16 }
  0xdf   : > { %1045 = vmatmul.bf16.vlgmr.msra.gmra.mxu0 %v860_v31  ;;  %v857_v52 = vrot.slane %v855_v50, 1 }
  0xe0   : > { %1211 = vmatpush.bf16.msra.mxu0 %v2108_v4  ;;  %v1073_v4 = vor.u32 %v1072_v38, %v1068_v35 }
  0xe1   : > { %v858_v34 = vor.u32 %v857_v52, %v853_v37 }
  0xe2   : > { %1164 = vmatpush.bf16.msrb.mxu2 %v2011_v41  ;;  %v1091_v41 = vrot.slane %v1718_v61, 1 }
  0xe3   : > { %1031 = vmatmul.bf16.vlgmr.msrb.gmra.mxu3 %v858_v34 }
  0xe4   : > { %1197 = vmatpush.bf16.msrb.mxu3 %v2001_v39  ;;  %1212 = vmatpush.bf16.msra.mxu0 %v2119_v12  ;;  %v1075_v39 = vrot.slane %v2244_v10, 1 }
  0xe6   : > { %1165 = vmatpush.bf16.msrb.mxu2 %v2029_v46  ;;  %v2293_v46 = vld [vmem:[%s2319_s5] ss:$0 sm:$0xff] }
  0xe8   : > { %1198 = vmatpush.bf16.msrb.mxu3 %v2020_v44  ;;  %1213 = vmatpush.bf16.msra.mxu0 %v2138_v21 }
  0xea   : > { %1166 = vmatpush.bf16.msrb.mxu2 %v2044_v49 }
  0xec   : > { %1199 = vmatpush.bf16.msrb.mxu3 %v2035_v47  ;;  %1214 = vmatpush.bf16.msra.mxu0 %v2155_v30 }
  0xed   : > { %1115 = vmatmul.bf16.vlgmr.msra.gmra.mxu2 %v1073_v4 }
  0xee   : > { %1167 = vmatpush.bf16.msrb.mxu2 %v2054_v51 }
  0xef   : > { %1143 = vmatmul.bf16.vlgmr.msrb.gmra.mxu0 %v1718_v61 }
  0xf0   : > { %1200 = vmatpush.bf16.msrb.mxu3 %v2096_v63  ;;  %1215 = vmatpush.bf16.msra.mxu0 %v2169_v32 }
  0xf2   : > { %1168 = vmatpush.bf16.msrb.mxu2 %v2063_v53 }
  0xf3   : > { %1129 = vmatmul.bf16.vlgmr.msra.gmra.mxu3 %v1075_v39 }
  0xf4   : > { %1201 = vmatpush.bf16.msrb.mxu3 %v2102_v0  ;;  %1216 = vmatpush.bf16.msra.mxu0 %v2183_v1 }
  0xf6   : > { %1169 = vmatpush.bf16.msrb.mxu2 %v2072_v56 }
  0xf8   : > { %1202 = vmatpush.bf16.msrb.mxu3 %v2113_v8  ;;  %1217 = vmatpush.bf16.msra.mxu0 %v2196_v5 }
  0xfa   : > { %1170 = vmatpush.bf16.msrb.mxu2 %v2081_v60 }
  0xfc   : > { %1203 = vmatpush.bf16.msrb.mxu3 %v2131_v20  ;;  %1218 = vmatpush.bf16.msra.mxu0 %v2209_v13 }
  0xfd   : > { %1171 = vmatmul.bf16.vlgmr.msrb.gmra.mxu2 %v1091_v41 }
 0x100   : > { %1204 = vmatpush.bf16.msrb.mxu3 %v2148_v26 }
 0x101   : > { %v1102_v56 = vpop.f32.mrf.mxu1 }
 0x102   : > { %v1103_v1 = vadd.f32 %v2228_v45, %v1102_v56 }
 0x109   : > { %v1104_v32 = vpop.f32.mrf.mxu1 }
 0x10a   : > { %v1105_v27 = vadd.f32 %v2228_v45, %v1104_v32 }
 0x12c   : > { %v1158_v10 = vpop.f32.mrf.mxu1 }
 0x134   : > { %v1160_v58 = vpop.f32.mrf.mxu1 }
 0x15c   : > { %v1046_v49 = vpop.f32.mrf.mxu0 }
 0x160   : > { %v1018_v44 = vpop.f32.mrf.mxu2 }
 0x161   : > { %v1019_v47 = vadd.f32 %v2293_v46, %v1018_v44 }
 0x164   : > { %v1048_v21 = vpop.f32.mrf.mxu0 }
 0x166   : > { %v1032_v51 = vpop.f32.mrf.mxu3 }
 0x167   : > { %v1033_v53 = vadd.f32 %v1032_v51, %v1019_v47 }
 0x168   : > { %v1020_v60 = vpop.f32.mrf.mxu2 }
 0x169   : > { %v1047_v63 = vadd.f32 %v1046_v49, %v1033_v53  ;;  %v1021_v8 = vadd.f32 %v2293_v46, %v1020_v60 }
 0x16b   : > { %v1051_v0 = vmax.f32 %v1047_v63, 0.0 }
 0x16c   : > { %v1144_v40 = vpop.f32.mrf.mxu0 }
 0x16d   : > { %1053 = vst [vmem:[%s2300_s13] sm:$0xff] %v1051_v0 }
 0x16e   : > { %v1034_v12 = vpop.f32.mrf.mxu3 }
 0x16f   : > { %v1035_v20 = vadd.f32 %v1034_v12, %v1021_v8 }
 0x170   : > { %v1116_v26 = vpop.f32.mrf.mxu2 }
 0x171   : > { %v1049_v30 = vadd.f32 %v1048_v21, %v1035_v20  ;;  %v1117_v13 = vadd.f32 %v1116_v26, %v1103_v1 }
 0x173   : > { %v1052_v5 = vmax.f32 %v1049_v30, 0.0 }
 0x174   : > { %v1146_v14 = vpop.f32.mrf.mxu0 }
 0x175   : > { %1054 = vst [vmem:[%s2300_s13 + $0x8] sm:$0xf] %v1052_v5 }
 0x176   : > { %v1130_v9 = vpop.f32.mrf.mxu3 }
 0x177   : > { %v1131_v6 = vadd.f32 %v1130_v9, %v1117_v13 }
 0x178   : > { %v1118_v17 = vpop.f32.mrf.mxu2 }
 0x179   : > { %v1145_v7 = vadd.f32 %v1144_v40, %v1131_v6  ;;  %v1119_v54 = vadd.f32 %v1118_v17, %v1105_v27 }
 0x17b   : > { %v1159_v11 = vadd.f32 %v1158_v10, %v1145_v7 }
 0x17e   : > { %v1132_v33 = vpop.f32.mrf.mxu3 }
 0x17f   : > { %v1133_v55 = vadd.f32 %v1132_v33, %v1119_v54 }
 0x180   : > { %v1172_v57 = vpop.f32.mrf.mxu2 }
 0x181   : > { %v1147_v18 = vadd.f32 %v1146_v14, %v1133_v55  ;;  %v1173_v15 = vadd.f32 %v1172_v57, %v1159_v11 }
 0x183   : > { %v1161_v59 = vadd.f32 %v1160_v58, %v1147_v18  ;;  %v1177_v23 = vmax.f32 %v1173_v15, 0.0 }
 0x185   : > { %v1179_v62 = vpack.c.bf16 %v1177_v23, %v1177_v23 }
 0x187   : > { %v1183_v24 = vunpack.c.l.b16 %v1179_v62 }
 0x188   : > { %v1174_v19 = vpop.f32.mrf.mxu2 }
 0x189   : > { %v1175_v61 = vadd.f32 %v1174_v19, %v1161_v59 }
 0x18b   : > { %v1178_v16 = vmax.f32 %v1175_v61, 0.0 }
 0x18d   : > { %v1180_v42 = vpack.c.bf16 %v1178_v16, %v1178_v16 }
 0x18f   : > { %v1184_v45 = vunpack.c.l.b16 %v1180_v42 }
 0x191   : > { %v1185_v28 = vpack.c.b16 %v1184_v45, %v1183_v24 }
 0x193   : > { %1205 = vmatmul.bf16.vlgmr.msrb.gmra.mxu3 %v1185_v28  ;;  %v1195_v43 = vrot.slane %v1185_v28, 1  ;;  %v1190_v25 = vshll.u32 %v1185_v28, 16  ;;  %v1188_v2 = vshrl.u32 %v1185_v28, 16 }
 0x195   : > { %1233 = vmatmul.bf16.vlgmr.msra.gmra.mxu1 %v1195_v43  ;;  %v1192_v36 = vrot.slane %v1190_v25, 1 }
 0x197   : > { %v1193_v22 = vor.u32 %v1192_v36, %v1188_v2 }
 0x199   : > { %1219 = vmatmul.bf16.vlgmr.msra.gmra.mxu0 %v1193_v22 }
 0x212   : > { %v1234_v50 = vpop.f32.mrf.mxu1 }
 0x216   : > { %v1206_v29 = vpop.f32.mrf.mxu3  ;;  %v1220_v48 = vpop.f32.mrf.mxu0 }
 0x217   : > { %v1207_v31 = vadd.f32 %v2293_v46, %v1206_v29 }
 0x219   : > { %v1221_v37 = vadd.f32 %v1220_v48, %v1207_v31 }
 0x21a   : > { %v1236_v39 = vpop.f32.mrf.mxu1 }
 0x21b   : > { %v1235_v52 = vadd.f32 %v1234_v50, %v1221_v37 }
 0x21d   : > { %v1239_v34 = vmax.f32 %v1235_v52, 0.0 }
 0x21e   : > { %v1208_v3 = vpop.f32.mrf.mxu3  ;;  %v1222_v38 = vpop.f32.mrf.mxu0 }
 0x21f   : > { %1636 = vst [vmem:[%s2300_s13 + $0x10] sm:$0xff] %v1239_v34  ;;  %v1209_v35 = vadd.f32 %v2293_v46, %v1208_v3 }
 0x221   : > { %v1223_v4 = vadd.f32 %v1222_v38, %v1209_v35 }
 0x223   : > { %v1237_v41 = vadd.f32 %v1236_v39, %v1223_v4 }
 0x225   : > { %v1240_v44 = vmax.f32 %v1237_v41, 0.0 }
 0x227   : > { %1637 = vst [vmem:[%s2300_s13 + $0x18] sm:$0xf] %v1240_v44 }
 0x228 PF: > { %s16_s21 = sadd.s32 1, %s1735_s21  }
 0x229   : > { %p13_p4 = scmp.ge.s32.totalorder %s16_s21, 4  }
 0x22b   :  { %15 = sbr.rel (!%p13_p4) target bundleno = 1 (0x1), region = 80 }

</bundles_post_ra>
